<compile_context>
chip_gen: v7x
topology: tpu7x:2x2x1
jax: 0.10.0
libtpu: 0.0.40
codegen_flags: <defaults>
</compile_context>

<pallas_src>
import jax
import jax.numpy as jnp
from jax.experimental import pallas as pl
from jax.experimental.pallas import tpu as pltpu


def attention_pooling_kernel(x_ref, mask_ref, w1_ref, b1_ref, g_ref, beta_ref,
                             w2_ref, out_ref):
    tb, s, d = x_ref.shape
    x = x_ref[...]                          # (TB, S, D) f32
    x2 = x.reshape(tb * s, d)               # merge leading dims -> big-M matmul

    # --- Linear(in_dim, in_dim): (TB*S, D) @ (D, D) + b1  (MXU) ---
    h = jnp.dot(x2, w1_ref[...], preferred_element_type=jnp.float32) + b1_ref[...]

    # --- LayerNorm(in_dim), eps=1e-5 ---
    mu = jnp.mean(h, axis=-1, keepdims=True)
    var = jnp.mean((h - mu) * (h - mu), axis=-1, keepdims=True)
    h = (h - mu) * jax.lax.rsqrt(var + jnp.float32(1e-5))
    h = h * g_ref[...] + beta_ref[...]

    # --- GELU (exact, erf-based, matches nn.GELU() default) ---
    h = 0.5 * h * (1.0 + jax.lax.erf(h * jnp.float32(0.7071067811865476)))

    # --- Linear(in_dim, 1) as VPU multiply + lane reduce -> (TB, S) ---
    # (N=1 MXU matmul would waste 127/128 columns; this runs on idle VPU/XLU
    #  slots.)  b2 is dropped: constant over S, cancels in the softmax.
    logits = jnp.sum((h * w2_ref[...]).reshape(tb, s, d), axis=-1)   # (TB, S)

    # --- masked softmax over the sequence axis, lane-dense (TB, S) layout ---
    mask = mask_ref[...].reshape(tb, s)
    logits = jnp.where(mask == 0, -jnp.inf, logits)
    m = jnp.max(logits, axis=-1, keepdims=True)
    e = jnp.exp(logits - m)
    w = e / jnp.sum(e, axis=-1, keepdims=True)                       # (TB, S)

    # --- weighted sum over S: batched (1, S) @ (S, D) mat-vec on the MXU ---
    out_ref[...] = jnp.einsum("bqs,bsd->bqd", w.reshape(tb, 1, s), x,
                              preferred_element_type=jnp.float32)


def _choose_tb(B, S, D, vmem_budget_bytes):
    """Pick the batch tile so (double-buffered x tile + f32 intermediates +
    resident weights) stays under the scoped-VMEM budget on all generations."""
    weight_bytes = (D * D + 4 * D) * 4
    budget = max(vmem_budget_bytes - 2 * weight_bytes, 1)
    per_row = (2 * S * D + 4 * S * D + 2 * D) * 4   # x (x2 buf) + h temps + out
    tb = max(1, min(B, budget // per_row))
    if B >= 2:
        # keep >= 2 grid steps so the parallel axis can shard across v7x's 2 TCs
        tb = min(tb, max(1, B // 2))
    while B % tb:
        tb -= 1
    return tb


def prepare_params(params):
    """One-time layout prep (call ONCE, outside the hot path)."""
    D = params["w1"].shape[0]
    return {
        "w1_t": jnp.asarray(params["w1"].T, jnp.float32),          # (D, D): x @ w1_t
        "b1": params["b1"].reshape(1, D).astype(jnp.float32),
        "gamma": params["ln_gamma"].reshape(1, D).astype(jnp.float32),
        "beta": params["ln_beta"].reshape(1, D).astype(jnp.float32),
        "w2_row": params["w2"].reshape(1, D).astype(jnp.float32),
        # b2 intentionally omitted: constant over S, cancels in softmax.
    }


def attention_pooling(last_hidden_state, attention_mask, prep,
                      *, vmem_budget_bytes=12 << 20):
    """last_hidden_state: (B, S, D), attention_mask: (B, S) of 0/1."""
    B, S, D = last_hidden_state.shape
    x = last_hidden_state.astype(jnp.float32)
    mask = attention_mask.astype(jnp.float32).reshape(B, 1, S)     # S on lanes

    TB = _choose_tb(B, S, D, vmem_budget_bytes)
    grid = (B // TB,)

    out = pl.pallas_call(
        attention_pooling_kernel,
        out_shape=jax.ShapeDtypeStruct((B, 1, D), jnp.float32),
        grid_spec=pltpu.PrefetchScalarGridSpec(
            num_scalar_prefetch=0,
            grid=grid,
            in_specs=[
                pl.BlockSpec((TB, S, D), lambda i: (i, 0, 0)),     # x tile
                pl.BlockSpec((TB, 1, S), lambda i: (i, 0, 0)),     # mask tile
                pl.BlockSpec((D, D), lambda i: (0, 0)),            # W1^T (resident)
                pl.BlockSpec((1, D), lambda i: (0, 0)),            # b1
                pl.BlockSpec((1, D), lambda i: (0, 0)),            # ln gamma
                pl.BlockSpec((1, D), lambda i: (0, 0)),            # ln beta
                pl.BlockSpec((1, D), lambda i: (0, 0)),            # w2 row
            ],
            out_specs=pl.BlockSpec((TB, 1, D), lambda i: (i, 0, 0)),
        ),
        compiler_params=pltpu.CompilerParams(
            dimension_semantics=("parallel",)),
    )(x, mask, prep["w1_t"], prep["b1"], prep["gamma"], prep["beta"],
      prep["w2_row"])
    return out.reshape(B, D)


def init_params(key, in_dim):
    k1, k2, k3, k4 = jax.random.split(key, 4)
    bound1 = 1.0 / jnp.sqrt(in_dim)
    return {
        "w1": jax.random.uniform(k1, (in_dim, in_dim), jnp.float32, -bound1, bound1),
        "b1": jax.random.uniform(k2, (in_dim,), jnp.float32, -bound1, bound1),
        "ln_gamma": jnp.ones((in_dim,), jnp.float32),
        "ln_beta": jnp.zeros((in_dim,), jnp.float32),
        "w2": jax.random.uniform(k3, (1, in_dim), jnp.float32, -bound1, bound1),
        "b2": jax.random.uniform(k4, (1,), jnp.float32, -bound1, bound1),
    }


def reference(last_hidden_state, attention_mask, params):
    x = last_hidden_state.astype(jnp.float32)
    h = x @ params["w1"].T + params["b1"]
    mu = jnp.mean(h, axis=-1, keepdims=True)
    var = jnp.mean((h - mu) ** 2, axis=-1, keepdims=True)
    h = (h - mu) / jnp.sqrt(var + 1e-5) * params["ln_gamma"] + params["ln_beta"]
    h = 0.5 * h * (1.0 + jax.lax.erf(h / jnp.sqrt(2.0)))
    logits = h @ params["w2"].T + params["b2"]            # (B, S, 1), b2 kept here
    logits = jnp.where(attention_mask[..., None] == 0, -jnp.inf, logits)
    w = jax.nn.softmax(logits, axis=1)
    return jnp.sum(w * x, axis=1)


if __name__ == "__main__":
    B, S, D = 2, 8, 32
    key = jax.random.PRNGKey(0)
    kx, kp = jax.random.split(key)

    x = jax.random.normal(kx, (B, S, D), dtype=jnp.float32)
    # deterministic mask: first row fully valid, second row has 5 valid tokens
    lengths = jnp.array([S, 5], dtype=jnp.int32)
    attention_mask = (jnp.arange(S)[None, :] < lengths[:, None]).astype(jnp.int32)

    params = init_params(kp, D)
    prep = prepare_params(params)      # one-time layout prep (not per call)

    out = attention_pooling(x, attention_mask, prep)
    out = jax.block_until_ready(out)

    ref = reference(x, attention_mask, params)
    assert out.shape == (B, D)
    assert jnp.allclose(out, ref, atol=1e-5, rtol=1e-5), "mismatch vs reference"
    print("KERNEL_OK")
</pallas_src>

<mosaic_0001>
module attributes {stable_mosaic.version = 11 : i64} {
  func.func @attention_pooling_kernel(%arg0: i32, %arg1: memref<1x8x32xf32, #tpu.memory_space<vmem>>, %arg2: memref<1x1x8xf32, #tpu.memory_space<vmem>>, %arg3: memref<32x32xf32, #tpu.memory_space<vmem>>, %arg4: memref<1x32xf32, #tpu.memory_space<vmem>>, %arg5: memref<1x32xf32, #tpu.memory_space<vmem>>, %arg6: memref<1x32xf32, #tpu.memory_space<vmem>>, %arg7: memref<1x32xf32, #tpu.memory_space<vmem>>, %arg8: memref<1x1x32xf32, #tpu.memory_space<vmem>>) attributes {dimension_semantics = [#tpu.dimension_semantics<parallel>], iteration_bounds = array<i64: 2>, scalar_prefetch = 0 : i64, scratch_operands = 0 : i64, tpu.core_type = #tpu.core_type<tc>, window_params = [{transform_indices = @transform_0, window_bounds = array<i64: 1, 8, 32>}, {transform_indices = @transform_1, window_bounds = array<i64: 1, 1, 8>}, {pipeline_mode = #tpu.pipeline_mode<synchronous>, transform_indices = @transform_2, window_bounds = array<i64: 32, 32>}, {pipeline_mode = #tpu.pipeline_mode<synchronous>, transform_indices = @transform_3, window_bounds = array<i64: 1, 32>}, {pipeline_mode = #tpu.pipeline_mode<synchronous>, transform_indices = @transform_4, window_bounds = array<i64: 1, 32>}, {pipeline_mode = #tpu.pipeline_mode<synchronous>, transform_indices = @transform_5, window_bounds = array<i64: 1, 32>}, {pipeline_mode = #tpu.pipeline_mode<synchronous>, transform_indices = @transform_6, window_bounds = array<i64: 1, 32>}, {transform_indices = @transform_7, window_bounds = array<i64: 1, 1, 32>}]} {
    %c0 = arith.constant 0 : index
    %c0_0 = arith.constant 0 : index
    %c0_1 = arith.constant 0 : index
    %0 = vector.load %arg1[%c0, %c0_0, %c0_1] : memref<1x8x32xf32, #tpu.memory_space<vmem>>, vector<1x8x32xf32>
    %1 = vector.shape_cast %0 : vector<1x8x32xf32> to vector<8x32xf32>
    %c0_2 = arith.constant 0 : index
    %c0_3 = arith.constant 0 : index
    %2 = vector.load %arg3[%c0_2, %c0_3] : memref<32x32xf32, #tpu.memory_space<vmem>>, vector<32x32xf32>
    %cst = arith.constant dense<0.000000e+00> : vector<8x32xf32>
    %3 = tpu.matmul %1, %2, %cst {dimension_numbers = #tpu.dot_dimension_numbers<[1], [0], [0], [1], [0, 0, 1, 1], [], []>} : vector<8x32xf32>, vector<32x32xf32>, vector<8x32xf32> -> vector<8x32xf32>
    %c0_4 = arith.constant 0 : index
    %c0_5 = arith.constant 0 : index
    %4 = vector.load %arg4[%c0_4, %c0_5] : memref<1x32xf32, #tpu.memory_space<vmem>>, vector<1x32xf32>
    %5 = vector.broadcast %4 : vector<1x32xf32> to vector<8x32xf32>
    %6 = arith.addf %3, %5 : vector<8x32xf32>
    %cst_6 = arith.constant dense<0.000000e+00> : vector<8xf32>
    %7 = vector.multi_reduction <add>, %6, %cst_6 [1] : vector<8x32xf32> to vector<8xf32>
    %8 = vector.shape_cast %7 : vector<8xf32> to vector<8x1xf32>
    %cst_7 = arith.constant 3.200000e+01 : f32
    %9 = vector.broadcast %cst_7 : f32 to vector<8x1xf32>
    %10 = arith.divf %8, %9 : vector<8x1xf32>
    %11 = vector.broadcast %10 : vector<8x1xf32> to vector<8x32xf32>
    %12 = arith.subf %6, %11 : vector<8x32xf32>
    %13 = vector.broadcast %10 : vector<8x1xf32> to vector<8x32xf32>
    %14 = arith.subf %6, %13 : vector<8x32xf32>
    %15 = arith.mulf %12, %14 : vector<8x32xf32>
    %cst_8 = arith.constant dense<0.000000e+00> : vector<8xf32>
    %16 = vector.multi_reduction <add>, %15, %cst_8 [1] : vector<8x32xf32> to vector<8xf32>
    %17 = vector.shape_cast %16 : vector<8xf32> to vector<8x1xf32>
    %cst_9 = arith.constant 3.200000e+01 : f32
    %18 = vector.broadcast %cst_9 : f32 to vector<8x1xf32>
    %19 = arith.divf %17, %18 : vector<8x1xf32>
    %20 = vector.broadcast %10 : vector<8x1xf32> to vector<8x32xf32>
    %21 = arith.subf %6, %20 : vector<8x32xf32>
    %cst_10 = arith.constant 9.99999974E-6 : f32
    %22 = vector.broadcast %cst_10 : f32 to vector<8x1xf32>
    %23 = arith.addf %19, %22 : vector<8x1xf32>
    %24 = math.rsqrt %23 : vector<8x1xf32>
    %25 = vector.broadcast %24 : vector<8x1xf32> to vector<8x32xf32>
    %26 = arith.mulf %21, %25 : vector<8x32xf32>
    %c0_11 = arith.constant 0 : index
    %c0_12 = arith.constant 0 : index
    %27 = vector.load %arg5[%c0_11, %c0_12] : memref<1x32xf32, #tpu.memory_space<vmem>>, vector<1x32xf32>
    %28 = vector.broadcast %27 : vector<1x32xf32> to vector<8x32xf32>
    %29 = arith.mulf %26, %28 : vector<8x32xf32>
    %c0_13 = arith.constant 0 : index
    %c0_14 = arith.constant 0 : index
    %30 = vector.load %arg6[%c0_13, %c0_14] : memref<1x32xf32, #tpu.memory_space<vmem>>, vector<1x32xf32>
    %31 = vector.broadcast %30 : vector<1x32xf32> to vector<8x32xf32>
    %32 = arith.addf %29, %31 : vector<8x32xf32>
    %cst_15 = arith.constant 5.000000e-01 : f32
    %33 = vector.broadcast %cst_15 : f32 to vector<8x32xf32>
    %34 = arith.mulf %33, %32 : vector<8x32xf32>
    %cst_16 = arith.constant 0.707106769 : f32
    %35 = vector.broadcast %cst_16 : f32 to vector<8x32xf32>
    %36 = arith.mulf %32, %35 : vector<8x32xf32>
    %37 = math.erf %36 : vector<8x32xf32>
    %cst_17 = arith.constant 1.000000e+00 : f32
    %38 = vector.broadcast %cst_17 : f32 to vector<8x32xf32>
    %39 = arith.addf %38, %37 : vector<8x32xf32>
    %40 = arith.mulf %34, %39 : vector<8x32xf32>
    %c0_18 = arith.constant 0 : index
    %c0_19 = arith.constant 0 : index
    %41 = vector.load %arg7[%c0_18, %c0_19] : memref<1x32xf32, #tpu.memory_space<vmem>>, vector<1x32xf32>
    %42 = vector.broadcast %41 : vector<1x32xf32> to vector<8x32xf32>
    %43 = arith.mulf %40, %42 : vector<8x32xf32>
    %44 = vector.shape_cast %43 : vector<8x32xf32> to vector<1x8x32xf32>
    %cst_20 = arith.constant dense<0.000000e+00> : vector<1x8xf32>
    %45 = vector.multi_reduction <add>, %44, %cst_20 [2] : vector<1x8x32xf32> to vector<1x8xf32>
    %c0_21 = arith.constant 0 : index
    %c0_22 = arith.constant 0 : index
    %c0_23 = arith.constant 0 : index
    %46 = vector.load %arg2[%c0_21, %c0_22, %c0_23] : memref<1x1x8xf32, #tpu.memory_space<vmem>>, vector<1x1x8xf32>
    %47 = vector.shape_cast %46 : vector<1x1x8xf32> to vector<1x8xf32>
    %cst_24 = arith.constant 0.000000e+00 : f32
    %48 = vector.broadcast %cst_24 : f32 to vector<1x8xf32>
    %49 = arith.cmpf oeq, %47, %48 : vector<1x8xf32>
    %cst_25 = arith.constant 0xFF800000 : f32
    %50 = vector.broadcast %cst_25 : f32 to vector<1x8xf32>
    %51 = arith.select %49, %50, %45 : vector<1x8xi1>, vector<1x8xf32>
    %cst_26 = arith.constant dense<0xFF800000> : vector<1xf32>
    %52 = vector.multi_reduction <maximumf>, %51, %cst_26 [1] : vector<1x8xf32> to vector<1xf32>
    %53 = vector.shape_cast %52 : vector<1xf32> to vector<1x1xf32>
    %54 = vector.broadcast %53 : vector<1x1xf32> to vector<1x8xf32>
    %55 = arith.subf %51, %54 : vector<1x8xf32>
    %56 = math.exp %55 : vector<1x8xf32>
    %cst_27 = arith.constant dense<0.000000e+00> : vector<1xf32>
    %57 = vector.multi_reduction <add>, %56, %cst_27 [1] : vector<1x8xf32> to vector<1xf32>
    %58 = vector.shape_cast %57 : vector<1xf32> to vector<1x1xf32>
    %59 = vector.broadcast %58 : vector<1x1xf32> to vector<1x8xf32>
    %60 = arith.divf %56, %59 : vector<1x8xf32>
    %61 = vector.shape_cast %60 : vector<1x8xf32> to vector<1x1x8xf32>
    "tpu.trace_start"() <{level = 10 : i32, message = "bqs,bsd->bqd"}> : () -> ()
    %cst_28 = arith.constant dense<0.000000e+00> : vector<1x1x32xf32>
    %62 = tpu.matmul %61, %0, %cst_28 {dimension_numbers = #tpu.dot_dimension_numbers<[2], [1], [1], [2], [0, 0, 0, 1, 1, 2], [0], [0]>} : vector<1x1x8xf32>, vector<1x8x32xf32>, vector<1x1x32xf32> -> vector<1x1x32xf32>
    "tpu.trace_stop"() : () -> ()
    %c0_29 = arith.constant 0 : index
    %c0_30 = arith.constant 0 : index
    %c0_31 = arith.constant 0 : index
    %63 = vector.load %arg8[%c0_29, %c0_30, %c0_31] : memref<1x1x32xf32, #tpu.memory_space<vmem>>, vector<1x1x32xf32>
    tpu.vector_store %arg8[%c0_29, %c0_30, %c0_31], %62 {strides = array<i32>} : memref<1x1x32xf32, #tpu.memory_space<vmem>>, vector<1x1x32xf32>,
    return
  }
  func.func @transform_0(%arg0: i32) -> (i32, i32, i32) {
    %c0_i32 = arith.constant 0 : i32
    %c0_i32_0 = arith.constant 0 : i32
    %c0_i32_1 = arith.constant 0 : i32
    return %arg0, %c0_i32, %c0_i32_0 : i32, i32, i32
  }
  func.func @transform_1(%arg0: i32) -> (i32, i32, i32) {
    %c0_i32 = arith.constant 0 : i32
    %c0_i32_0 = arith.constant 0 : i32
    %c0_i32_1 = arith.constant 0 : i32
    return %arg0, %c0_i32, %c0_i32_0 : i32, i32, i32
  }
  func.func @transform_2(%arg0: i32) -> (i32, i32) {
    %c0_i32 = arith.constant 0 : i32
    %c0_i32_0 = arith.constant 0 : i32
    %c0_i32_1 = arith.constant 0 : i32
    return %c0_i32, %c0_i32_0 : i32, i32
  }
  func.func @transform_3(%arg0: i32) -> (i32, i32) {
    %c0_i32 = arith.constant 0 : i32
    %c0_i32_0 = arith.constant 0 : i32
    %c0_i32_1 = arith.constant 0 : i32
    return %c0_i32, %c0_i32_0 : i32, i32
  }
  func.func @transform_4(%arg0: i32) -> (i32, i32) {
    %c0_i32 = arith.constant 0 : i32
    %c0_i32_0 = arith.constant 0 : i32
    %c0_i32_1 = arith.constant 0 : i32
    return %c0_i32, %c0_i32_0 : i32, i32
  }
  func.func @transform_5(%arg0: i32) -> (i32, i32) {
    %c0_i32 = arith.constant 0 : i32
    %c0_i32_0 = arith.constant 0 : i32
    %c0_i32_1 = arith.constant 0 : i32
    return %c0_i32, %c0_i32_0 : i32, i32
  }
  func.func @transform_6(%arg0: i32) -> (i32, i32) {
    %c0_i32 = arith.constant 0 : i32
    %c0_i32_0 = arith.constant 0 : i32
    %c0_i32_1 = arith.constant 0 : i32
    return %c0_i32, %c0_i32_0 : i32, i32
  }
  func.func @transform_7(%arg0: i32) -> (i32, i32, i32) {
    %c0_i32 = arith.constant 0 : i32
    %c0_i32_0 = arith.constant 0 : i32
    %c0_i32_1 = arith.constant 0 : i32
    return %arg0, %c0_i32, %c0_i32_0 : i32, i32, i32
  }
}

</mosaic_0001>

<bundles_post_ra>
// kernel: tpu_custom_call.1
= control target key start
LH: loop header
LB: loop body
LE: loop exit
PB: predicated region body
PF: predicated region fallthrough
CT: control target
= control target key end

     0   :  { %12 = vsyncpa [#allocation3], 0  ;;  %s1268_s0 = inlined_call_operand.hbm [shape: f32[2,8,32], index: 0, kind: input, shape index: {}]   ;;  %s1269_s1 = inlined_call_operand.vmem [shape: f32[2,1,8], index: 1, kind: input, shape index: {}]   ;;  %s1270_s2 = inlined_call_operand.hbm [shape: f32[32,32], index: 2, kind: input, shape index: {}]   ;;  %s1271_s3 = inlined_call_operand.vmem [shape: f32[1,32], index: 3, kind: input, shape index: {}]   ;;  %s1272_s4 = inlined_call_operand.vmem [shape: f32[1,32], index: 4, kind: input, shape index: {}]   ;;  %s1273_s5 = inlined_call_operand.vmem [shape: f32[1,32], index: 5, kind: input, shape index: {}]   ;;  %s1274_s6 = inlined_call_operand.vmem [shape: f32[1,32], index: 6, kind: input, shape index: {}]   ;;  %s1275_s7 = inlined_call_operand.hbm [shape: f32[2,1,32], index: 7, kind: output, shape index: {}]  }
   0x1   :  { %14 = vsyncpa [#allocation3 + $0x1], 0 }
   0x2   :  { %15 = vsyncpa [#allocation6], 0 }
   0x3   :  { %16 = vsyncpa [#allocation4], 0 }
   0x4   :  { %18 = vsyncpa [#allocation4 + $0x1], 0  ;;  %s1050_s24 = smov 0   ;;  %s1052_s25 = smov 0  }
   0x5   :  { %s1054_s26 = smov 0   ;;  %s1056_s27 = smov 0  }
   0x6 LB: > { %s1071_s28 = sadd.s32 4294967295, %s998_s27   ;;  %s749_s29 = sadd.s32 4294967294, %s998_s27   ;;  %s998_s27 = sphi %s1056_s27, %s1295_s27   ;;  %s994_s26 = sphi %s1054_s26, %s1294_s26   ;;  %s990_s25 = sphi %s1052_s25, %s1293_s25   ;;  %s986_s24 = sphi %s1050_s24, %s1292_s24  }
   0x7   : > { %p44_p0 = scmp.ne.s32.totalorder %s990_s25, %s986_s24  ;;  %p1276_p1 = scmp.eq.s32.totalorder %s1071_s28, 0 }
   0x8   : > { %p205_p3 = scmp.eq.s32.totalorder %s749_s29, 1  ;;  %p750_p5 = scmp.ge.s32.totalorder %s998_s27, 1 }
   0x9   : > { %p1080_p4 = por %p1276_p1, %p44_p0  ;;  %p212_p7 = scmp.lt.s32.totalorder %s998_s27, 3 }
   0xa   : > { %p1085_p6 = por %p205_p3, %p44_p0  ;;  %s1000_s10 = smov [#allocation5]  }
   0xb   : > { %s1279_s30 = scalar_select %p1080_p4, 1, 0 }
   0xc   : > { %s1280_s8 = scalar_select %p1085_p6, 1, 0 }
   0xd   : > { %p1090_p8 = pnand %p750_p5, %p212_p7  ;;  %s224_s11 = sshll.u32 %s1000_s10, 4  ;;  %s1094_s11 = int_to_ptr.vmem [resolvable:$true] %s224_s11 }
   0xe   : > { %s1106_s13 = sadd.s32 1, %s998_s27   ;;  %s31_s14 = sadd.s32 1, %s994_s26 }
   0xf   : > { %s1281_s9 = scalar_select %p1090_p8, 1, 0 }
  0x10   : > { %p804_p9 = pneg %p1090_p8  ;;  %s28_s15 = ssub.s32 %s998_s27, %s1106_s13 }
  0x11   : > { %s870_s18 = scalar_lea.hbm %s1270_s2, 512 }
  0x12   : > { %p1101_p11 = pnand %p804_p9, %p1276_p1  ;;  %p871_p12 = scmp.ne.s32.totalorder %s1270_s2, %s870_s18 }
  0x13   : > { %p877_p5 = scmp.lt.u32.totalorder %s870_s18, %s1270_s2 }
  0x14   : > { %p872_p13 = pneg %p1101_p11 }
  0x16   : > { %p873_p0 = pnand %p872_p13, %p871_p12 }
  0x18   : > { %p874_p3 = pneg %p873_p0 }
  0x1a   : > { %p879_p7 = pnand %p877_p5, %p874_p3 }
  0x1c   : > { %882 = shalt.err (!%p879_p7)
}
  0x1d   : > { %s883_s23 = scalar_lea.vmem %s1094_s11, 512  ;;  %p891_p2 = scmp.lt.s32.totalorder %s1094_s11, %s1094_s11 }
  0x1e   : > { %p884_p9 = scmp.ne.s32.totalorder %s1094_s11, %s883_s23  ;;  %p892_p6 = scmp.lt.s32.totalorder %s883_s23, %s883_s23 }
  0x20   : > { %p886_p10 = pnand %p884_p9, %p872_p13  ;;  %p893_p4 = por %p892_p6, %p891_p2 }
  0x22   : > { %p887_p1 = pneg %p886_p10 }
  0x24   : > { %p894_p8 = pnand %p893_p4, %p887_p1 }
  0x26   : > { %897 = shalt.err (!%p894_p8)
}
  0x27   : > { %s1001_s29 = smov 128   ;;  %s1002_s10 = smov 8  }
  0x28   : > { %807 = dma.hbm_to_vmem [thread:$0]  (!%p1101_p11), %s1270_s2, 512, %s1094_s11, [#allocation6], %s1001_s29, %s1001_s29, %s1002_s10  }
  0x29   : > { %p29_p2 = scmp.eq.s32.totalorder %s28_s15, 0  ;;  %p38_p1 = scmp.ne.s32.totalorder %s994_s26, %s990_s25 }
  0x2a   : > { %p39_p4 = scmp.eq.s32.totalorder %s998_s27, 0  ;;  %p817_p6 = scmp.lt.s32.totalorder %s998_s27, 2 }
  0x2b   : > { %s1137_s18 = scalar_select %p29_p2, %s994_s26, %s31_s14  }
  0x2c   : > { %p40_p8 = por %p39_p4, %p38_p1  ;;  %p1283_p10 = scmp.eq.s32.totalorder %s1071_s28, 1 }
  0x2d   : > { %s250_s20 = sand.u32 1, %s994_s26   ;;  %s754_s21 = sshll.u32 %s998_s27, 7 }
  0x2e   : > { %p1141_p12 = por %p1283_p10, %p38_p1  ;;  %s753_s22 = sshll.u32 %s250_s20, 3 }
  0x2f   : > { %s1150_s16 = scalar_lea.hbm %s1268_s0, %s754_s21  ;;  %s254_s11 = scalar_lea.vmem [#allocation2], %s753_s22 }
  0x30   : > { %s261_s14 = sshll.u32 %s254_s11, 4  ;;  %p1152_p11 = pnand %p817_p6, %p40_p8  ;;  %s1156_s14 = int_to_ptr.vmem [resolvable:$true] %s261_s14 }
  0x31   : > { %s251_s29 = scalar_lea.sflag [#allocation3], %s250_s20  ;;  %s898_s10 = scalar_lea.hbm %s1150_s16, 128 }
  0x32   : > { %p899_p13 = scmp.ne.s32.totalorder %s1150_s16, %s898_s10  ;;  %p900_p0 = pneg %p1152_p11 }
  0x33   : > { %s903_s22 = scalar_lea.hbm %s1268_s0, 256  ;;  %p904_p7 = scmp.lt.u32.totalorder %s1150_s16, %s1268_s0 }
  0x34   : > { %p901_p3 = pnand %p900_p0, %p899_p13  ;;  %p905_p9 = scmp.lt.u32.totalorder %s903_s22, %s898_s10 }
  0x35   : > { %p907_p1 = scmp.lt.u32.totalorder %s898_s10, %s1150_s16 }
  0x36   : > { %p902_p5 = pneg %p901_p3  ;;  %p906_p2 = por %p905_p9, %p904_p7 }
  0x38   : > { %p908_p4 = por %p907_p1, %p906_p2 }
  0x3a   : > { %p909_p6 = pnand %p908_p4, %p902_p5 }
  0x3c   : > { %912 = shalt.err (!%p909_p6)
}
  0x3d   : > { %s913_s20 = scalar_lea.vmem %s1156_s14, 128  ;;  %s1003_s11 = smov [#allocation2]  }
  0x3e   : > { %p914_p8 = scmp.ne.s32.totalorder %s1156_s14, %s913_s20  ;;  %s918_s17 = sshll.u32 %s1003_s11, 4  ;;  %s919_s17 = int_to_ptr.vmem [resolvable:$false] %s918_s17 }
  0x3f   : > { %s920_s21 = scalar_lea.vmem %s919_s17, 256  ;;  %p921_p3 = scmp.lt.s32.totalorder %s1156_s14, %s919_s17 }
  0x40   : > { %p916_p10 = pnand %p914_p8, %p900_p0  ;;  %p922_p7 = scmp.lt.s32.totalorder %s920_s21, %s913_s20 }
  0x42   : > { %p917_p13 = pneg %p916_p10  ;;  %p923_p9 = por %p922_p7, %p921_p3 }
  0x44   : > { %p924_p2 = pnand %p923_p9, %p917_p13 }
  0x46   : > { %927 = shalt.err (!%p924_p2)
}
  0x47   : > { %811 = dma.hbm_to_vmem [thread:$0]  (!%p1152_p11), %s1150_s16, 128, %s1156_s14, %s251_s29  }
  0x48   : > { %p1286_p5 = scmp.ne.s32.totalorder %s1281_s9, 0 }
  0x49   : > { %s1186_s10 = sand.u32 (!%p1286_p5), 1, %s990_s25   ;;  %p1287_p0 = scmp.ne.s32.totalorder (!%p1286_p5), %s1279_s30, 0 }
  0x4a   : > { %276 = sbr.rel (%p1286_p5) target bundleno = 1472 (0x5c0), region = 48  ;;  %s756_s22 = sshll.u32 (!%p1286_p5), %s1186_s10, 3 }
  0x4b   : > { %s279_s12 = scalar_lea.sflag (!%p1286_p5), [#allocation3], %s1186_s10  ;;  %s282_s23 = scalar_lea.vmem (!%p1286_p5), [#allocation2], %s756_s22 }
  0x51   : > { %973 = dma.done.wait (%p1287_p0), %s279_s12, 128  }
  0x52   : > { %975 = vsyncadd (%p1287_p0), %s279_s12, 4294967168  ;;  %p1288_p1 = scmp.eq.s32.totalorder %s1071_s28, 0 }
  0x54   : > { %977 = dma.done.wait (%p1288_p1), [#allocation6], 512   ;;  %p1289_p11 = pmov %p1288_p1 }
  0x55   : > { %v1004_v0 = vmov 0.0|0.0   ;;  %vm1005_vm0 = vmmov 0   ;;  %v1006_v1 = vmov 0.0   ;;  %v323_v2 = vld [vmem:[#allocation5] sm:$0xff]  ;;  %v324_v3 = vld [vmem:[#allocation5 + $0x8] sm:$0xff]  ;;  %v325_v4 = vld [vmem:[#allocation5 + $0x10] sm:$0xff]  ;;  %v457_v37 = vlaneseq }
  0x56   : > { %979 = vsyncadd (%p1289_p11), [#allocation6], 4294966784  ;;  %790 = vmatprep.subr.bf16.mxu0 %v1004_v0  ;;  %782 = vmatprep.mubr.msk.f32.mxu0 %vm1005_vm0, %v1006_v1  ;;  %v791_v5 = vpack.c.bf16 %v324_v3, %v323_v2  ;;  %v326_v6 = vld [vmem:[#allocation5 + $0x18] sm:$0xff]  ;;  %vm334_vm1 = vcmask 261120   ;;  %v758_v9 = vld [vmem:[%s1271_s3] ss:$0 sm:$0xff] }
  0x57   : > { %785 = vmatprep.subr.mxu1 %v1006_v1  ;;  %787 = vmatprep.mubr.msk.f32.mxu1 %vm1005_vm0, %v1006_v1  ;;  %v322_v7 = vld [vmem:[%s282_s23] sm:$0xff]  ;;  %v794_v8 = vpack.c.bf16 %v326_v6, %v325_v4  ;;  %v1007_v36 = vmov 0   ;;  %v458_v38 = vshrl.u32 %v457_v37, 7  ;;  %v542_v39 = vand.u32 127, %v457_v37  ;;  %p319_p4 = scmp.lt.s32.totalorder %s1071_s28, 1  ;;  %s764_s23 = sshll.u32 %s1071_s28, 4 }
  0x58   : > { %786 = vmatpush3.msra.mxu1 %v322_v7  ;;  %792 = vmatpush3.bf16.msra.mxu0 %v791_v5  ;;  %v760_v23 = vld [vmem:[%s1272_s4] ss:$0 sm:$0xff]  ;;  %v1008_v41 = vmov 1966171168   ;;  %vm563_vm3 = vcmask 57344   ;;  %vm575_vm4 = vcmask 64512   ;;  %s1224_s15 = scalar_lea.hbm %s1275_s7, %s764_s23 }
  0x59   : > { %793 = vmatprep.subr.bf16.mxu0 %v1004_v0  ;;  %v761_v25 = vld [vmem:[%s1273_s5] ss:$0 sm:$0xff]  ;;  %860 = vset.pattern.permute.xlu1 %v1007_v36  ;;  %v545_v40 = vsub.s32 %v542_v39, %v458_v38  ;;  %v494_v42 = vunpack.c.l.s4 %v1008_v41  ;;  %v459_v44 = vsub.s32 0, %v458_v38  ;;  %v463_v45 = vsub.s32 1, %v458_v38  ;;  %s320_s17 = scalar_select %p319_p4, %s1071_s28, 1 }
  0x5a   : > { %v762_v32 = vld [vmem:[%s1274_s6] ss:$0 sm:$0xff]  ;;  %861 = vset.pattern.permute.xlu0 %v1007_v36  ;;  %v467_v46 = vsub.s32 2, %v458_v38  ;;  %v471_v47 = vsub.s32 3, %v458_v38  ;;  %v475_v48 = vsub.s32 4, %v458_v38  ;;  %v479_v49 = vsub.s32 5, %v458_v38 }
  0x5b   : > { %v495_v43 = vunpack.c.0.s8 %v494_v42  ;;  %v483_v50 = vsub.s32 6, %v458_v38  ;;  %v487_v51 = vsub.s32 7, %v458_v38  ;;  %s321_s12 = scalar_lea.vmem %s1269_s1, %s320_s17  ;;  %s318_s30 = scalar_lea.vmem [#allocation7], %s1186_s10  ;;  %vm649_vm5 = vcmask 253952  }
  0x5c   : > { %795 = vmatpush3.bf16.msra.mxu0 %v794_v8  ;;  %s664_s9 = sshll.u32 %s318_s30, 4  ;;  %s652_s29 = scalar_lea.sflag [#allocation4], %s1186_s10  ;;  %s1226_s9 = int_to_ptr.vmem [resolvable:$true] %s664_s9 }
  0x5d   : > { %v498_v53 = vsub.s32 %v495_v43, %v458_v38  ;;  %s928_s20 = scalar_lea.vmem %s1226_s9, 16  ;;  %s1009_s28 = smov [#allocation7]  }
  0x5e   : > { %p929_p6 = scmp.ne.s32.totalorder %s1226_s9, %s928_s20  ;;  %s932_s11 = sshll.u32 %s1009_s28, 4  ;;  %s933_s11 = int_to_ptr.vmem [resolvable:$false] %s932_s11 }
  0x5f   : > { %783 = vmatmul.mubr.msk.f32.vlgmr.msra.gmra.mrb[0].mxu0 %vm334_vm1, %v322_v7  ;;  %s934_s17 = scalar_lea.vmem %s933_s11, 32  ;;  %p935_p13 = scmp.lt.s32.totalorder %s1226_s9, %s933_s11 }
  0x60   : > { %p930_p8 = pnand %p929_p6, %p1141_p12  ;;  %p936_p3 = scmp.lt.s32.totalorder %s934_s17, %s928_s20 }
  0x62   : > { %p931_p10 = pneg %p930_p8  ;;  %p937_p7 = por %p936_p3, %p935_p13 }
  0x64   : > { %p938_p9 = pnand %p937_p7, %p931_p10 }
 0x132   : > { %v404_v10 = vpop.f32.mrb[0].mxu0 }
 0x133   : > { %v405_v11 = vadd.f32 %v758_v9, %v404_v10  ;;  %v784_v12 = vpop.f32.mrb[1].mxu0 }
 0x135   : > { %v408_v13 = vsel %vm334_vm1, %v405_v11, 0.0 }
 0x136   : > { %409 = vadd.xlane.f32.xlu0 %v408_v13  ;;  %v454_v13 = vld [vmem:[%s321_s12] sm:$0x1] }
 0x137   : > { %vm455_vm2 = vcmp.eq.f32.partialorder %v454_v13, 0.0 }
 0x1c3   : > { %v410_v14 = vpop.xlane.xlu0 %409 }
 0x1c4   : > { %v412_v15 = vmul.f32 0.03125, %v410_v14 }
 0x1c6   : > { %v413_v16 = vsub.f32 %v405_v11, %v412_v15 }
 0x1c8   : > { %v414_v17 = vmul.f32 %v413_v16, %v413_v16 }
 0x1ca   : > { %v415_v18 = vsel %vm334_vm1, %v414_v17, 0.0 }
 0x1cb   : > { %416 = vadd.xlane.f32.xlu0 %v415_v18 }
 0x258   : > { %v417_v19 = vpop.xlane.xlu0 %416 }
 0x259   : > { %v418_v20 = vmul.f32 0.03125, %v417_v19 }
 0x25b   : > { %v419_v21 = vadd.f32 1e-05, %v418_v20 }
 0x25d   : > { %862 = vrsqrt.f32 %v419_v21 }
 0x267   : > { %v863_v22 = vpop.eup %862 }
 0x268   : > { %v421_v24 = vmul.f32 %v863_v22, %v413_v16 }
 0x26a   : > { %v429_v26 = vmul.f32 %v760_v23, %v421_v24 }
 0x26c   : > { %v437_v27 = vadd.f32 %v761_v25, %v429_v26 }
 0x26e   : > { %v439_v28 = vmul.f32 0.70710677, %v437_v27  ;;  %v438_v30 = vmul.f32 0.5, %v437_v27 }
 0x270   : > { %864 = verf.f32 %v439_v28 }
 0x27a   : > { %v865_v29 = vpop.eup %864 }
 0x27b   : > { %v441_v31 = vadd.f32 1.0, %v865_v29 }
 0x27d   : > { %v442_v33 = vmul.f32 %v441_v31, %v438_v30 }
 0x27f   : > { %v450_v34 = vmul.f32 %v762_v32, %v442_v33 }
 0x281   : > { %v451_v35 = vsel %vm334_vm1, %v450_v34, 0.0 }
 0x282   : > { %452 = vadd.xlane.f32.xlu1 %v451_v35 }
 0x30f   : > { %v453_v52 = vpop.xlane.xlu1 %452 }
 0x310   : > { %v460_v54 = vrot.slane %v453_v52, %v459_v44  ;;  %v464_v55 = vrot.slane %v453_v52, %v463_v45  ;;  %v468_v56 = vrot.slane %v453_v52, %v467_v46  ;;  %v472_v57 = vrot.slane %v453_v52, %v471_v47 }
 0x311   : > { %v476_v58 = vrot.slane %v453_v52, %v475_v48  ;;  %v480_v59 = vrot.slane %v453_v52, %v479_v49  ;;  %v484_v60 = vrot.slane %v453_v52, %v483_v50  ;;  %v488_v61 = vrot.slane %v453_v52, %v487_v51 }
 0x312   : > { %v489_v62 = vcombine.low %v460_v54, %v464_v55  ;;  %v490_v63 = vcombine.low %v468_v56, %v472_v57 }
 0x313   : > { %v491_v0 = vcombine.low %v476_v58, %v480_v59  ;;  %v492_v1 = vcombine.low %v484_v60, %v488_v61 }
 0x314   : > { %v499_v2 = vrot.slane %v489_v62, %v498_v53  ;;  %v506_v3 = vrot.slane %v490_v63, %v498_v53 }
 0x315   : > { %v513_v4 = vrot.slane %v491_v0, %v498_v53  ;;  %v520_v5 = vrot.slane %v492_v1, %v498_v53 }
 0x316   : > { %v521_v6 = vcombine.low %v499_v2, %v506_v3 }
 0x317   : > { %v522_v7 = vcombine.low %v513_v4, %v520_v5 }
 0x318   : > { %v529_v8 = vrot.slane %v521_v6, %v498_v53 }
 0x319   : > { %v536_v9 = vrot.slane %v522_v7, %v498_v53 }
 0x31b   : > { %v537_v10 = vcombine.low %v529_v8, %v536_v9 }
 0x31d   : > { %539 = vperm.xlu1 %860, %v537_v10  }
 0x39c   : > { %v540_v11 = vpop.permute.xlu1 %539 }
 0x39d   : > { %v546_v12 = vrot.slane %v540_v11, %v545_v40 }
 0x39f   : > { %v553_v14 = vrot.slane %v546_v12, %v498_v53 }
 0x3a1   : > { %v560_v15 = vrot.slane %v553_v14, %v498_v53 }
 0x3a3   : > { %v562_v16 = vsel %vm455_vm2, -inf, %v560_v15 }
 0x3a4   : > { %v564_v17 = vsel %vm563_vm3, %v562_v16, -inf }
 0x3a5   : > { %565 = vmax.xlane.f32.xlu0 %v564_v17 }
 0x432   : > { %v566_v18 = vpop.xlane.xlu0 %565 }
 0x433   : > { %v567_v19 = vsub.f32 %v562_v16, %v566_v18 }
 0x435   : > { %v568_v20 = vmul.f32 1.442695, %v567_v19 }
 0x437   : > { %866 = vpow2.f32 %v568_v20 }
 0x441   : > { %v867_v21 = vpop.eup %866 }
 0x442   : > { %v570_v22 = vsel %vm563_vm3, %v867_v21, 0.0 }
 0x443   : > { %571 = vadd.xlane.f32.xlu0 %v570_v22 }
 0x4d0   : > { %v572_v23 = vpop.xlane.xlu0 %571 }
 0x4d1   : > { %868 = vrcp.f32 %v572_v23 }
 0x4db   : > { %v869_v24 = vpop.eup %868 }
 0x4dc   : > { %v574_v25 = vmul.f32 %v869_v24, %v867_v21 }
 0x4de   : > { %788 = vmatmul.mubr.msk.f32.vlgmr.msra.gmra.mrb[0].mxu1 %vm575_vm4, %v574_v25 }
 0x5b1   : > { %v645_v26 = vpop.f32.mrb[0].mxu1 }
 0x5b2   : > { %650 = vst.msk [vmem:[%s318_s30] sm:$0x1] %vm649_vm5, %v645_v26  ;;  %v789_v27 = vpop.f32.mrb[1].mxu1 }
 0x5b3   : > { %941 = shalt.err (!%p938_p9)
}
 0x5b4   : > { %s942_s10 = scalar_lea.hbm %s1224_s15, 16  ;;  %s946_s12 = scalar_lea.hbm %s1275_s7, 32 }
 0x5b5   : > { %p943_p2 = scmp.ne.s32.totalorder %s1224_s15, %s942_s10  ;;  %p947_p1 = scmp.lt.u32.totalorder %s1224_s15, %s1275_s7 }
 0x5b6   : > { %p948_p11 = scmp.lt.u32.totalorder %s946_s12, %s942_s10  ;;  %p950_p6 = scmp.lt.u32.totalorder %s942_s10, %s1224_s15 }
 0x5b7   : > { %p944_p5 = pnand %p943_p2, %p1141_p12 }
 0x5b8   : > { %p949_p4 = por %p948_p11, %p947_p1 }
 0x5b9   : > { %p945_p0 = pneg %p944_p5 }
 0x5ba   : > { %p951_p8 = por %p950_p6, %p949_p4 }
 0x5bc   : > { %p952_p10 = pnand %p951_p8, %p945_p0 }
 0x5be   : > { %955 = shalt.err (!%p952_p10)
}
 0x5bf   : > { %802 = dma.vmem_to_hbm [thread:$0]  (%p1141_p12), %s1226_s9, 16, %s1224_s15, %s652_s29  }
 0x5c0 PF: > { %s676_s16 = sand.u32 1, %s986_s24   ;;  %p1290_p13 = scmp.ne.s32.totalorder %s1280_s8, 0 }
 0x5c1   : > { %p1291_p3 = scmp.ge.s32.totalorder %s998_s27, 2  ;;  %s677_s14 = scalar_lea.sflag [#allocation4], %s676_s16 }
 0x5c3   : > { %p813_p7 = pnand %p1291_p3, %p1290_p13 }
 0x5c5   : > { %981 = dma.done.wait (!%p813_p7), %s677_s14, 16  }
 0x5c6   : > { %983 = vsyncadd (!%p813_p7), %s677_s14, 4294967280  ;;  %p21_p9 = scmp.ge.s32.totalorder %s1106_s13, 4   ;;  %s1292_s24 = smov %s990_s25 }
 0x5c7   : > { %s1293_s25 = smov %s994_s26  ;;  %s1294_s26 = smov %s1137_s18 }
 0x5c8   : > { %s1295_s27 = smov %s1106_s13  ;;  %23 = sbr.rel (!%p21_p9) target bundleno = 6 (0x6), region = 100 }
 0x5cf   :  { %681 = vsyncpa [#allocation3], 1 }
 0x5d0   :  { %683 = vsyncpa [#allocation3 + $0x1], 1 }
 0x5d1   :  { %684 = vsyncpa [#allocation6], 1 }
 0x5d2   :  { %685 = vsyncpa [#allocation4], 1 }
 0x5d3   :  { %687 = vsyncpa [#allocation4 + $0x1], 1 }

</bundles_post_ra>
